<compile_context>
chip_gen: v6e
topology: v6e:2x2x1
jax: 0.10.0
libtpu: 0.0.40
codegen_flags: <defaults>
</compile_context>

<pallas_src>
import functools

import jax
import jax.numpy as jnp
from jax.experimental import pallas as pl
from jax.experimental.pallas import tpu as pltpu


def _round_up(x, m):
    return (x + m - 1) // m * m


def arcface_kernel(emb_ref, wt_ref, labels_ref, loss_ref,
                   m_sc, l_sc, t_sc, *,
                   num_classes, c_tile, margin, scale):
    c = pl.program_id(1)

    @pl.when(c == 0)
    def _():
        m_sc[...] = jnp.full_like(m_sc, -jnp.inf)
        l_sc[...] = jnp.zeros_like(l_sc)
        t_sc[...] = jnp.zeros_like(t_sc)

    emb = emb_ref[...]                        # (B_TILE, D)
    wt = wt_ref[...]                          # (D, C_TILE)  -- (K, N) layout
    labels = labels_ref[...]                  # (B_TILE, 1) int32

    # Per-class inverse L2 norm as a post-matmul column scale:
    # rsqrt(max(sum_d w^2, eps^2)) == 1 / max(||w||_2, eps), eps = 1e-12
    # (matches F.normalize's clamp).
    wt_f32 = wt.astype(jnp.float32)
    inv_norm = jax.lax.rsqrt(
        jnp.maximum(jnp.sum(wt_f32 * wt_f32, axis=0, keepdims=True), 1e-24)
    )                                         # (1, C_TILE)

    # cosine = emb @ w.T with un-normalized weight, then scale columns.
    cosine = jax.lax.dot_general(
        emb, wt,
        dimension_numbers=(((1,), (0,)), ((), ())),
        preferred_element_type=jnp.float32,
    ) * inv_norm                              # (B_TILE, C_TILE) f32

    # Fused one-hot margin + padded-class masking (no one_hot temporary).
    col = jax.lax.broadcasted_iota(jnp.int32, cosine.shape, 1) + c * c_tile
    is_target = col == labels                 # (B_TILE, C_TILE) bool
    valid = col < num_classes                 # mask zero-padded class columns

    logits = scale * jnp.where(is_target, cosine - margin, cosine)
    logits = jnp.where(valid, logits, -1e30)

    # Online softmax accumulation over class tiles.
    m_prev = m_sc[...]
    m_new = jnp.maximum(m_prev, jnp.max(logits, axis=1, keepdims=True))
    alpha = jnp.exp(m_prev - m_new)
    p = jnp.exp(logits - m_new)
    l_sc[...] = alpha * l_sc[...] + jnp.sum(p, axis=1, keepdims=True)
    m_sc[...] = m_new
    t_sc[...] = t_sc[...] + jnp.sum(
        jnp.where(jnp.logical_and(is_target, valid), logits, 0.0),
        axis=1, keepdims=True)

    @pl.when(c == pl.num_programs(1) - 1)
    def _():
        lse = m_sc[...] + jnp.log(l_sc[...])
        loss_ref[...] = lse - t_sc[...]       # per-example cross-entropy


def arcface_loss(embeddings, weight, labels, margin=0.5, scale=30.0):
    """ArcFace loss (scalar, mean over batch)."""
    B, D = embeddings.shape
    C, Dw = weight.shape
    assert D == Dw

    # Tile sizes: class tile lane-dense (multiple of 128), batch tile a
    # multiple of 8 (sublane).  Conservative sizes fit every generation's
    # scoped VMEM (v7x has only 64 MiB physical).
    C_TILE = min(512, _round_up(C, 128))
    B_TILE = min(128, _round_up(B, 8))
    C_pad = _round_up(C, C_TILE)
    B_pad = _round_up(B, B_TILE)

    # Pad batch rows / class columns (masked out inside the kernel / wrapper).
    emb = embeddings
    if B_pad != B:
        emb = jnp.pad(emb, ((0, B_pad - B), (0, 0)))
    w_t = weight.T                             # (D, C): (K, N) layout for the MXU
    if C_pad != C:
        w_t = jnp.pad(w_t, ((0, 0), (0, C_pad - C)))
    labels2d = labels.reshape(-1, 1).astype(jnp.int32)
    if B_pad != B:
        labels2d = jnp.pad(labels2d, ((0, B_pad - B), (0, 0)))

    grid = (B_pad // B_TILE, C_pad // C_TILE)

    kernel = functools.partial(
        arcface_kernel,
        num_classes=C, c_tile=C_TILE,
        margin=float(margin), scale=float(scale),
    )

    per_example = pl.pallas_call(
        kernel,
        out_shape=jax.ShapeDtypeStruct((B_pad, 1), jnp.float32),
        grid_spec=pltpu.PrefetchScalarGridSpec(
            num_scalar_prefetch=0,
            grid=grid,
            in_specs=[
                pl.BlockSpec((B_TILE, D), lambda b, c: (b, 0)),      # embeddings
                pl.BlockSpec((D, C_TILE), lambda b, c: (0, c)),      # weight.T
                pl.BlockSpec((B_TILE, 1), lambda b, c: (b, 0)),      # labels
            ],
            out_specs=pl.BlockSpec((B_TILE, 1), lambda b, c: (b, 0)),
            scratch_shapes=[pltpu.VMEM((B_TILE, 1), jnp.float32)] * 3,
        ),
        compiler_params=pltpu.CompilerParams(
            dimension_semantics=("parallel", "arbitrary"),
            vmem_limit_bytes=64 * 1024 * 1024,
        ),
    )(emb, w_t, labels2d)

    return jnp.sum(per_example[:B, 0]) / B


def xavier_uniform(key, out_features, in_features):
    # nn.init.xavier_uniform_ for a (out, in) weight.
    bound = jnp.sqrt(6.0 / (in_features + out_features))
    return jax.random.uniform(
        key, (out_features, in_features), jnp.float32, minval=-bound, maxval=bound
    )


if __name__ == "__main__":
    # Small shapes consistent with the module: embedding_dim=32, num_classes=16, batch=8.
    B, D, C = 8, 32, 16
    margin, scale = 0.5, 30.0

    key = jax.random.PRNGKey(0)
    k_w, k_e, k_l = jax.random.split(key, 3)

    weight = xavier_uniform(k_w, C, D)                        # (num_classes, embedding_dim)
    embeddings = jax.random.normal(k_e, (B, D), jnp.float32)  # (batch, embedding_dim)
    labels = jax.random.randint(k_l, (B,), 0, C, jnp.int32)   # (batch,)

    loss = arcface_loss(embeddings, weight, labels, margin=margin, scale=scale)
    jax.block_until_ready(loss)

    # Pure-JAX reference check.
    wn = weight / jnp.maximum(
        jnp.sqrt(jnp.sum(weight * weight, axis=1, keepdims=True)), 1e-12)
    cosine = embeddings @ wn.T
    one_hot = jax.nn.one_hot(labels, C, dtype=jnp.float32)
    logits = (cosine - one_hot * margin) * scale
    ref = jnp.mean(jax.nn.logsumexp(logits, axis=1)
                   - jnp.sum(one_hot * logits, axis=1))

    assert jnp.allclose(loss, ref, rtol=1e-5, atol=1e-5), (loss, ref)
    print("KERNEL_OK")
</pallas_src>

<mosaic_0001>
module attributes {stable_mosaic.version = 11 : i64} {
  func.func @arcface_kernel(%arg0: i32, %arg1: i32, %arg2: memref<8x32xf32, #tpu.memory_space<vmem>>, %arg3: memref<32x128xf32, #tpu.memory_space<vmem>>, %arg4: memref<8x1xi32, #tpu.memory_space<vmem>>, %arg5: memref<8x1xf32, #tpu.memory_space<vmem>>, %arg6: memref<8x1xf32, #tpu.memory_space<vmem>>, %arg7: memref<8x1xf32, #tpu.memory_space<vmem>>, %arg8: memref<8x1xf32, #tpu.memory_space<vmem>>) attributes {dimension_semantics = [#tpu.dimension_semantics<parallel>, #tpu.dimension_semantics<arbitrary>], iteration_bounds = array<i64: 1, 1>, scalar_prefetch = 0 : i64, scratch_operands = 3 : i64, tpu.core_type = #tpu.core_type<tc>, window_params = [{transform_indices = @transform_0, window_bounds = array<i64: 8, 32>}, {transform_indices = @transform_1, window_bounds = array<i64: 32, 128>}, {transform_indices = @transform_2, window_bounds = array<i64: 8, 1>}, {transform_indices = @transform_3, window_bounds = array<i64: 8, 1>}]} {
    %c0_i32 = arith.constant 0 : i32
    %0 = arith.cmpi eq, %arg1, %c0_i32 : i32
    %1 = arith.extui %0 : i1 to i32
    %c0_i32_0 = arith.constant 0 : i32
    %2 = arith.cmpi ne, %1, %c0_i32_0 : i32
    scf.if %2 {
      %cst_29 = arith.constant 0xFF800000 : f32
      %57 = vector.broadcast %cst_29 : f32 to vector<8x1xf32>
      %c0_30 = arith.constant 0 : index
      %c0_31 = arith.constant 0 : index
      %58 = vector.load %arg6[%c0_30, %c0_31] : memref<8x1xf32, #tpu.memory_space<vmem>>, vector<8x1xf32>
      tpu.vector_store %arg6[%c0_30, %c0_31], %57 {strides = array<i32>} : memref<8x1xf32, #tpu.memory_space<vmem>>, vector<8x1xf32>,
      %cst_32 = arith.constant 0.000000e+00 : f32
      %59 = vector.broadcast %cst_32 : f32 to vector<8x1xf32>
      %c0_33 = arith.constant 0 : index
      %c0_34 = arith.constant 0 : index
      %60 = vector.load %arg7[%c0_33, %c0_34] : memref<8x1xf32, #tpu.memory_space<vmem>>, vector<8x1xf32>
      tpu.vector_store %arg7[%c0_33, %c0_34], %59 {strides = array<i32>} : memref<8x1xf32, #tpu.memory_space<vmem>>, vector<8x1xf32>,
      %cst_35 = arith.constant 0.000000e+00 : f32
      %61 = vector.broadcast %cst_35 : f32 to vector<8x1xf32>
      %c0_36 = arith.constant 0 : index
      %c0_37 = arith.constant 0 : index
      %62 = vector.load %arg8[%c0_36, %c0_37] : memref<8x1xf32, #tpu.memory_space<vmem>>, vector<8x1xf32>
      tpu.vector_store %arg8[%c0_36, %c0_37], %61 {strides = array<i32>} : memref<8x1xf32, #tpu.memory_space<vmem>>, vector<8x1xf32>,
    } else {
    }
    %c0 = arith.constant 0 : index
    %c0_1 = arith.constant 0 : index
    %3 = vector.load %arg2[%c0, %c0_1] : memref<8x32xf32, #tpu.memory_space<vmem>>, vector<8x32xf32>
    %c0_2 = arith.constant 0 : index
    %c0_3 = arith.constant 0 : index
    %4 = vector.load %arg3[%c0_2, %c0_3] : memref<32x128xf32, #tpu.memory_space<vmem>>, vector<32x128xf32>
    %c0_4 = arith.constant 0 : index
    %c0_5 = arith.constant 0 : index
    %5 = vector.load %arg4[%c0_4, %c0_5] : memref<8x1xi32, #tpu.memory_space<vmem>>, vector<8x1xi32>
    %6 = arith.mulf %4, %4 : vector<32x128xf32>
    %cst = arith.constant dense<0.000000e+00> : vector<128xf32>
    %7 = vector.multi_reduction <add>, %6, %cst [0] : vector<32x128xf32> to vector<128xf32>
    %8 = vector.shape_cast %7 : vector<128xf32> to vector<1x128xf32>
    %cst_6 = arith.constant 1.000000e-24 : f32
    %9 = vector.broadcast %cst_6 : f32 to vector<1x128xf32>
    %10 = arith.maximumf %8, %9 : vector<1x128xf32>
    %11 = math.rsqrt %10 : vector<1x128xf32>
    %cst_7 = arith.constant dense<0.000000e+00> : vector<8x128xf32>
    %12 = tpu.matmul %3, %4, %cst_7 {dimension_numbers = #tpu.dot_dimension_numbers<[1], [0], [0], [1], [0, 0, 1, 1], [], []>} : vector<8x32xf32>, vector<32x128xf32>, vector<8x128xf32> -> vector<8x128xf32>
    %13 = vector.broadcast %11 : vector<1x128xf32> to vector<8x128xf32>
    %14 = arith.mulf %12, %13 : vector<8x128xf32>
    %15 = tpu.iota {dimensions = array<i32: 1>} : vector<8x128xi32>
    %c128_i32 = arith.constant 128 : i32
    %16 = arith.muli %arg1, %c128_i32 : i32
    %17 = vector.broadcast %16 : i32 to vector<8x128xi32>
    %18 = arith.addi %15, %17 : vector<8x128xi32>
    %19 = vector.broadcast %5 : vector<8x1xi32> to vector<8x128xi32>
    %20 = arith.cmpi eq, %18, %19 : vector<8x128xi32>
    %c16_i32 = arith.constant 16 : i32
    %21 = vector.broadcast %c16_i32 : i32 to vector<8x128xi32>
    %22 = arith.cmpi slt, %18, %21 : vector<8x128xi32>
    %cst_8 = arith.constant 5.000000e-01 : f32
    %23 = vector.broadcast %cst_8 : f32 to vector<8x128xf32>
    %24 = arith.subf %14, %23 : vector<8x128xf32>
    %25 = arith.select %20, %24, %14 : vector<8x128xi1>, vector<8x128xf32>
    %cst_9 = arith.constant 3.000000e+01 : f32
    %26 = vector.broadcast %cst_9 : f32 to vector<8x128xf32>
    %27 = arith.mulf %26, %25 : vector<8x128xf32>
    %cst_10 = arith.constant -1.000000e+30 : f32
    %28 = vector.broadcast %cst_10 : f32 to vector<8x128xf32>
    %29 = arith.select %22, %27, %28 : vector<8x128xi1>, vector<8x128xf32>
    %c0_11 = arith.constant 0 : index
    %c0_12 = arith.constant 0 : index
    %30 = vector.load %arg6[%c0_11, %c0_12] : memref<8x1xf32, #tpu.memory_space<vmem>>, vector<8x1xf32>
    %cst_13 = arith.constant dense<0xFF800000> : vector<8xf32>
    %31 = vector.multi_reduction <maximumf>, %29, %cst_13 [1] : vector<8x128xf32> to vector<8xf32>
    %32 = vector.shape_cast %31 : vector<8xf32> to vector<8x1xf32>
    %33 = arith.maximumf %30, %32 : vector<8x1xf32>
    %34 = arith.subf %30, %33 : vector<8x1xf32>
    %35 = math.exp %34 : vector<8x1xf32>
    %36 = vector.broadcast %33 : vector<8x1xf32> to vector<8x128xf32>
    %37 = arith.subf %29, %36 : vector<8x128xf32>
    %38 = math.exp %37 : vector<8x128xf32>
    %c0_14 = arith.constant 0 : index
    %c0_15 = arith.constant 0 : index
    %39 = vector.load %arg7[%c0_14, %c0_15] : memref<8x1xf32, #tpu.memory_space<vmem>>, vector<8x1xf32>
    %40 = arith.mulf %35, %39 : vector<8x1xf32>
    %cst_16 = arith.constant dense<0.000000e+00> : vector<8xf32>
    %41 = vector.multi_reduction <add>, %38, %cst_16 [1] : vector<8x128xf32> to vector<8xf32>
    %42 = vector.shape_cast %41 : vector<8xf32> to vector<8x1xf32>
    %43 = arith.addf %40, %42 : vector<8x1xf32>
    %c0_17 = arith.constant 0 : index
    %c0_18 = arith.constant 0 : index
    %44 = vector.load %arg7[%c0_17, %c0_18] : memref<8x1xf32, #tpu.memory_space<vmem>>, vector<8x1xf32>
    tpu.vector_store %arg7[%c0_17, %c0_18], %43 {strides = array<i32>} : memref<8x1xf32, #tpu.memory_space<vmem>>, vector<8x1xf32>,
    %c0_19 = arith.constant 0 : index
    %c0_20 = arith.constant 0 : index
    %45 = vector.load %arg6[%c0_19, %c0_20] : memref<8x1xf32, #tpu.memory_space<vmem>>, vector<8x1xf32>
    tpu.vector_store %arg6[%c0_19, %c0_20], %33 {strides = array<i32>} : memref<8x1xf32, #tpu.memory_space<vmem>>, vector<8x1xf32>,
    %c0_21 = arith.constant 0 : index
    %c0_22 = arith.constant 0 : index
    %46 = vector.load %arg8[%c0_21, %c0_22] : memref<8x1xf32, #tpu.memory_space<vmem>>, vector<8x1xf32>
    %47 = arith.andi %20, %22 : vector<8x128xi1>
    %cst_23 = arith.constant 0.000000e+00 : f32
    %48 = vector.broadcast %cst_23 : f32 to vector<8x128xf32>
    %49 = arith.select %47, %29, %48 : vector<8x128xi1>, vector<8x128xf32>
    %cst_24 = arith.constant dense<0.000000e+00> : vector<8xf32>
    %50 = vector.multi_reduction <add>, %49, %cst_24 [1] : vector<8x128xf32> to vector<8xf32>
    %51 = vector.shape_cast %50 : vector<8xf32> to vector<8x1xf32>
    %52 = arith.addf %46, %51 : vector<8x1xf32>
    %c0_25 = arith.constant 0 : index
    %c0_26 = arith.constant 0 : index
    %53 = vector.load %arg8[%c0_25, %c0_26] : memref<8x1xf32, #tpu.memory_space<vmem>>, vector<8x1xf32>
    tpu.vector_store %arg8[%c0_25, %c0_26], %52 {strides = array<i32>} : memref<8x1xf32, #tpu.memory_space<vmem>>, vector<8x1xf32>,
    %c0_i32_27 = arith.constant 0 : i32
    %54 = arith.cmpi eq, %arg1, %c0_i32_27 : i32
    %55 = arith.extui %54 : i1 to i32
    %c0_i32_28 = arith.constant 0 : i32
    %56 = arith.cmpi ne, %55, %c0_i32_28 : i32
    scf.if %56 {
      %c0_29 = arith.constant 0 : index
      %c0_30 = arith.constant 0 : index
      %57 = vector.load %arg6[%c0_29, %c0_30] : memref<8x1xf32, #tpu.memory_space<vmem>>, vector<8x1xf32>
      %c0_31 = arith.constant 0 : index
      %c0_32 = arith.constant 0 : index
      %58 = vector.load %arg7[%c0_31, %c0_32] : memref<8x1xf32, #tpu.memory_space<vmem>>, vector<8x1xf32>
      %59 = math.log %58 : vector<8x1xf32>
      %60 = arith.addf %57, %59 : vector<8x1xf32>
      %c0_33 = arith.constant 0 : index
      %c0_34 = arith.constant 0 : index
      %61 = vector.load %arg8[%c0_33, %c0_34] : memref<8x1xf32, #tpu.memory_space<vmem>>, vector<8x1xf32>
      %62 = arith.subf %60, %61 : vector<8x1xf32>
      %c0_35 = arith.constant 0 : index
      %c0_36 = arith.constant 0 : index
      %63 = vector.load %arg5[%c0_35, %c0_36] : memref<8x1xf32, #tpu.memory_space<vmem>>, vector<8x1xf32>
      tpu.vector_store %arg5[%c0_35, %c0_36], %62 {strides = array<i32>} : memref<8x1xf32, #tpu.memory_space<vmem>>, vector<8x1xf32>,
    } else {
    }
    return
  }
  func.func @transform_0(%arg0: i32, %arg1: i32) -> (i32, i32) {
    %c0_i32 = arith.constant 0 : i32
    %c0_i32_0 = arith.constant 0 : i32
    return %arg0, %c0_i32 : i32, i32
  }
  func.func @transform_1(%arg0: i32, %arg1: i32) -> (i32, i32) {
    %c0_i32 = arith.constant 0 : i32
    %c0_i32_0 = arith.constant 0 : i32
    return %c0_i32, %arg1 : i32, i32
  }
  func.func @transform_2(%arg0: i32, %arg1: i32) -> (i32, i32) {
    %c0_i32 = arith.constant 0 : i32
    %c0_i32_0 = arith.constant 0 : i32
    return %arg0, %c0_i32 : i32, i32
  }
  func.func @transform_3(%arg0: i32, %arg1: i32) -> (i32, i32) {
    %c0_i32 = arith.constant 0 : i32
    %c0_i32_0 = arith.constant 0 : i32
    return %arg0, %c0_i32 : i32, i32
  }
}

</mosaic_0001>

<bundles_post_ra>
// kernel: tpu_custom_call.1
= control target key start
LH: loop header
LB: loop body
LE: loop exit
PB: predicated region body
PF: predicated region fallthrough
CT: control target
= control target key end

     0   :  { %8 = vsyncpa [#allocation6], 0  ;;  %s249_s12 = smov [#allocation5]   ;;  %s295_s0 = inlined_call_operand.vmem [shape: f32[8,32], index: 0, kind: input, shape index: {}]   ;;  %s296_s1 = inlined_call_operand.hbm [shape: f32[32,128], index: 1, kind: input, shape index: {}]   ;;  %s297_s2 = inlined_call_operand.vmem [shape: s32[8,1], index: 2, kind: input, shape index: {}]   ;;  %s298_s3 = inlined_call_operand.vmem [shape: f32[8,1], index: 3, kind: output, shape index: {}]  }
   0x1   :  { %s16_s13 = sshll.u32 %s249_s12, 4  ;;  %s17_s13 = int_to_ptr.vmem [resolvable:$true] %s16_s13 }
   0x2   :  { %s235_s14 = scalar_lea.vmem %s17_s13, 512  ;;  %p240_p1 = scmp.lt.s32.totalorder %s17_s13, %s17_s13 }
   0x3   :  { %p236_p0 = scmp.ne.s32.totalorder %s17_s13, %s235_s14  ;;  %p241_p2 = scmp.lt.s32.totalorder %s235_s14, %s235_s14 }
   0x5   :  { %p242_p3 = por %p241_p2, %p240_p1 }
   0x7   :  { %p243_p4 = pnand %p242_p3, %p236_p0 }
   0x9   :  { %246 = shalt.err (!%p243_p4)
}
   0xa   :  { %s250_s15 = smov 128   ;;  %s251_s16 = smov 8  }
   0xb   :  { %22 = dma.hbm_to_vmem [thread:$0]  %s296_s1, 512, %s17_s13, [#allocation6], %s250_s15, %s250_s15, %s251_s16  }
   0xc   :  { %247 = dma.done.wait [#allocation6], 512  }
   0xd   :  { %248 = vsyncadd [#allocation6], 4294966784  ;;  %v252_v0 = vmov 0.0   ;;  %vm253_vm0 = vmmov 0   ;;  %v254_v1 = vmov 0   ;;  %v40_v2 = vld [vmem:[#allocation5 + $0x18] sm:$0xff]  ;;  %v132_v23 = vlaneseq }
   0xe   :  { %199 = vmatprep.subr.mxu0 %v252_v0  ;;  %207 = vmatprep.mubr.msk.f32.mxu0 %vm253_vm0, %v252_v0  ;;  %v39_v3 = vld [vmem:[#allocation5 + $0x10] sm:$0xff]  ;;  %v38_v4 = vld [vmem:[#allocation5 + $0x8] sm:$0xff]  ;;  %v37_v6 = vld [vmem:[#allocation5] sm:$0xff]  ;;  %v45_v10 = vmul.f32 %v40_v2, %v40_v2  ;;  %vm57_vm1 = vcmask 261120   ;;  %vm32_vm2 = vcmask 7168   ;;  %v255_v15 = vmov -inf  }
   0xf   :  { %217 = vset.pattern.permute.xlu0 %v254_v1  ;;  %218 = vset.pattern.permute.xlu1 %v254_v1  ;;  %v43_v5 = vmul.f32 %v38_v4, %v38_v4  ;;  %v41_v7 = vld [vmem:[%s297_s2] sm:$0xff]  ;;  %v44_v8 = vmul.f32 %v39_v3, %v39_v3  ;;  %v42_v9 = vmul.f32 %v37_v6, %v37_v6  ;;  %v133_v25 = vand.u32 127, %v132_v23 }
  0x10   :  { %200 = vmatpush3.msra.mxu0 %v40_v2  ;;  %138 = vperm.xlu0 %217, %v41_v7   ;;  %v36_v12 = vld [vmem:[%s295_s0] sm:$0xff]  ;;  %33 = vst.msk [vmem:[#allocation2] sm:$0xff] %vm32_vm2, %v255_v15  ;;  %34 = vst.msk [vmem:[#allocation3] sm:$0xff] %vm32_vm2, %v252_v0 }
  0x11   :  { %201 = vmatprep.subr.mxu0 %v252_v0  ;;  %v46_v11 = vadd.f32 %v43_v5, %v42_v9  ;;  %35 = vst.msk [vmem:[#allocation4] sm:$0xff] %vm32_vm2, %v252_v0  ;;  %vm141_vm4 = vcmp.lt.s32.totalorder %v133_v25, 16 }
  0x12   :  { %202 = vmatpush3.msra.mxu0 %v39_v3 }
  0x13   :  { %203 = vmatprep.subr.mxu0 %v252_v0  ;;  %v47_v13 = vadd.f32 %v46_v11, %v44_v8 }
  0x14   :  { %204 = vmatpush3.msra.mxu0 %v38_v4 }
  0x15   :  { %205 = vmatprep.subr.mxu0 %v252_v0  ;;  %v48_v14 = vadd.f32 %v47_v13, %v45_v10 }
  0x16   :  { %206 = vmatpush3.msra.mxu0 %v37_v6 }
  0x17   :  { %208 = vmatmul.mubr.msk.f32.vlgmr.msra.gmra.mxu0 %vm57_vm1, %v36_v12  ;;  %v49_v16 = vrot.slane %v48_v14, 4  ;;  %v146_v35 = vld [vmem:[#allocation2] sm:$0xff]  ;;  %v161_v48 = vld [vmem:[#allocation3] sm:$0xff] }
  0x18   :  { %v169_v38 = vld [vmem:[#allocation4] sm:$0xff] }
  0x19   :  { %v50_v17 = vadd.f32 %v49_v16, %v48_v14 }
  0x1b   :  { %v51_v18 = vrot.slane %v50_v17, 2 }
  0x1d   :  { %v52_v19 = vadd.f32 %v51_v18, %v50_v17 }
  0x1f   :  { %v53_v20 = vrot.slane %v52_v19, 1 }
  0x21   :  { %v54_v21 = vadd.f32 %v53_v20, %v52_v19 }
  0x23   :  { %v55_v22 = vmax.f32 %v54_v21, 1e-24 }
  0x25   :  { %219 = vrsqrt.f32 %v55_v22 }
  0x32   :  { %v220_v24 = vpop.eup %219 }
  0x8b   :  { %v139_v26 = vpop.permute.xlu0 %138 }
  0x8c   :  { %vm140_vm3 = vcmp.eq.s32.totalorder %v133_v25, %v139_v26 }
  0x8d   :  { %vm170_vm5 = vmand %vm140_vm3, %vm141_vm4 }
  0xd7   :  { %v127_v27 = vpop.f32.mrf.mxu0 }
  0xd8   :  { %v131_v28 = vmul.f32 %v220_v24, %v127_v27 }
  0xd9   :  { %v209_v29 = vpop.f32.mrf.mxu0 }
  0xda   :  { %v193_v30 = vadd.f32 -0.5, %v131_v28 }
  0xdc   :  { %v143_v31 = vsel %vm140_vm3, %v193_v30, %v131_v28 }
  0xdd   :  { %v144_v32 = vmul.f32 30.0, %v143_v31 }
  0xdf   :  { %v145_v33 = vsel %vm141_vm4, %v144_v32, -1e+30 }
  0xe0   :  { %147 = vmax.xlane.f32.xlu0 %v145_v33  ;;  %v171_v34 = vsel %vm170_vm5, %v145_v33, 0.0 }
  0xe4   :  { %172 = vadd.xlane.f32.xlu0 %v171_v34 }
 0x169   :  { %v148_v36 = vpop.xlane.xlu0 %147 }
 0x16a   :  { %v149_v37 = vmax.f32 %v146_v35, %v148_v36 }
 0x16c   :  { %v150_v39 = vsub.f32 %v146_v35, %v149_v37  ;;  %168 = vst.msk [vmem:[#allocation2] sm:$0xff] %vm32_vm2, %v149_v37  ;;  %155 = vperm.xlu1 %218, %v149_v37  }
 0x16d   :  { %v173_v40 = vpop.xlane.xlu0 %172 }
 0x16e   :  { %v174_v41 = vadd.f32 %v173_v40, %v169_v38  ;;  %v151_v46 = vmul.f32 1.442695, %v150_v39 }
 0x170   :  { %175 = vst.msk [vmem:[#allocation4] sm:$0xff] %vm32_vm2, %v174_v41 }
 0x173   :  { %v179_v55 = vld [vmem:[#allocation2] sm:$0xff] }
 0x177   :  { %v184_v57 = vld [vmem:[#allocation4] sm:$0xff] }
 0x1e7   :  { %v156_v42 = vpop.permute.xlu1 %155 }
 0x1e8   :  { %v158_v43 = vsub.f32 %v145_v33, %v156_v42 }
 0x1ea   :  { %v159_v44 = vmul.f32 1.442695, %v158_v43 }
 0x1ec   :  { %221 = vpow2.f32 %v159_v44 }
 0x1ed   :  { %223 = vpow2.f32 %v151_v46 }
 0x1f9   :  { %v222_v45 = vpop.eup %221 }
 0x1fa   :  { %163 = vadd.xlane.f32.xlu1 %v222_v45  ;;  %v224_v47 = vpop.eup %223 }
 0x1fb   :  { %v162_v49 = vmul.f32 %v224_v47, %v161_v48 }
 0x283   :  { %v164_v50 = vpop.xlane.xlu1 %163 }
 0x284   :  { %v165_v51 = vadd.f32 %v164_v50, %v162_v49 }
 0x286   :  { %167 = vst.msk [vmem:[#allocation3] sm:$0xff] %vm32_vm2, %v165_v51 }
 0x28d   :  { %v180_v52 = vld [vmem:[#allocation3] sm:$0xff] }
 0x28e   :  { %225 = vlog2.f32 %v180_v52 }
 0x29b   :  { %v226_v53 = vpop.eup %225 }
 0x29c   :  { %v182_v54 = vmul.f32 0.6931472, %v226_v53 }
 0x29e   :  { %v183_v56 = vadd.f32 %v182_v54, %v179_v55 }
 0x2a0   :  { %v185_v58 = vsub.f32 %v183_v56, %v184_v57 }
 0x2a2   :  { %186 = vst.msk [vmem:[%s298_s3] sm:$0xff] %vm32_vm2, %v185_v58 }
 0x2a3   :  { %191 = vsyncpa [#allocation6], 1 }

</bundles_post_ra>
